<compile_context>
chip_gen: v6e
topology: v6e:2x2x1
jax: 0.10.0
libtpu: 0.0.40
codegen_flags: <defaults>
</compile_context>

<pallas_src>
import functools

import jax
import jax.numpy as jnp
from jax.experimental import pallas as pl
from jax.experimental.pallas import tpu as pltpu


# ----------------------------------------------------------------------------
# Kernel 1: hoisted input projection (no dependence on recurrent state).
#   xu[g, s] = x[s] @ Uall_g^T + (uall_b_g + wall_b_g)
# ----------------------------------------------------------------------------
def _input_proj_kernel(x_ref, w_ref, b_ref, out_ref):
    # x_ref: (b, D) bf16, w_ref: (D, H) bf16, b_ref: (1, H) f32 -> out (b, H) f32
    out_ref[...] = (
        jnp.dot(x_ref[...], w_ref[...], preferred_element_type=jnp.float32)
        + b_ref[...])


def input_projection(x_sbd, uall_wt_gates, gate_bias):
    """x_sbd: (seq, b, D) bf16; uall_wt_gates: (4, D, H) bf16;
       gate_bias: (4, 1, H) f32 -> xu_gates: (4, seq, b, H) f32."""
    seq, b, D = x_sbd.shape
    H = uall_wt_gates.shape[-1]
    return pl.pallas_call(
        _input_proj_kernel,
        out_shape=jax.ShapeDtypeStruct((4, seq, b, H), jnp.float32),
        grid=(4, seq),
        in_specs=[
            pl.BlockSpec((None, b, D), lambda g, s: (s, 0, 0)),   # x step s
            pl.BlockSpec((None, D, H), lambda g, s: (g, 0, 0)),   # Uall_g^T
            pl.BlockSpec((None, 1, H), lambda g, s: (g, 0, 0)),   # fused bias_g
        ],
        out_specs=pl.BlockSpec((None, None, b, H), lambda g, s: (g, s, 0, 0)),
        compiler_params=pltpu.CompilerParams(
            dimension_semantics=("parallel", "parallel")),
    )(x_sbd, uall_wt_gates, gate_bias)


# ----------------------------------------------------------------------------
# Kernel 2: TimeLSTM recurrence over the seq grid axis + fused MLP head on the
# final step.  h/c carried in VMEM scratch (f32); matmul operands bf16.
# ----------------------------------------------------------------------------
def _time_lstm_mlp_kernel(n_mlp, xu_ref, t_ref, wd_wt_ref, wd_b_ref,
                          wall_wt_ref, *rest):
    mlp_refs = rest[:2 * n_mlp]
    out_ref = rest[2 * n_mlp]
    h_sc = rest[2 * n_mlp + 1]
    c_sc = rest[2 * n_mlp + 2]

    s = pl.program_id(0)

    @pl.when(s == 0)
    def _():
        h_sc[...] = jnp.zeros_like(h_sc)
        c_sc[...] = jnp.zeros_like(c_sc)

    h = h_sc[...]                                   # (b, H) f32
    c = c_sc[...]                                   # (b, H) f32

    # Time-decay path: c_s1 = tanh(W_d(c)); c_adj = (c - c_s1) + c_s1 * dt
    c_s1 = jnp.tanh(
        jnp.dot(c.astype(jnp.bfloat16), wd_wt_ref[...],
                preferred_element_type=jnp.float32) + wd_b_ref[...])
    c_adj = (c - c_s1) + c_s1 * t_ref[s]            # t_ref[s]: (b, 1) broadcast

    # Gate pre-activations: h @ Wall_g^T + (x @ Uall_g^T + bias_g)  (xu has
    # both biases folded in).  Per-gate weights -> lane-aligned, no slicing.
    h_bf = h.astype(jnp.bfloat16)
    gates = []
    for g in range(4):
        pre = (jnp.dot(h_bf, wall_wt_ref[g],
                       preferred_element_type=jnp.float32) + xu_ref[g])
        gates.append(jax.nn.sigmoid(pre))           # all four gates use sigmoid
    f_g, i_g, o_g, ctmp_g = gates                   # (as in the reference code)

    c_new = f_g * c_adj + i_g * ctmp_g
    h_new = o_g * jnp.tanh(c_new)
    c_sc[...] = c_new
    h_sc[...] = h_new

    # MLP head fused into the last grid step (Dropout == identity, inference).
    @pl.when(s == pl.num_programs(0) - 1)
    def _():
        z = h_new
        for li in range(n_mlp):
            w = mlp_refs[2 * li][...]               # (in, out) bf16, pre-transposed
            bias = mlp_refs[2 * li + 1][...]        # (1, out) f32
            z = (jnp.dot(z.astype(jnp.bfloat16), w,
                         preferred_element_type=jnp.float32) + bias)
            if li < n_mlp - 1:
                z = jnp.maximum(z, 0.0)             # ReLU
        out_ref[...] = z.astype(out_ref.dtype)


# ----------------------------------------------------------------------------
# Full module forward
# ----------------------------------------------------------------------------
def time_lstm_mlp_forward(x, timestamps, lstm_params, mlp_params):
    """x: (b, seq, D) f32, timestamps: (b, seq) f32 -> (b, ntargets) f32."""
    b, seq, D = x.shape
    H = lstm_params["wd_w"].shape[0]
    ntargets = mlp_params[-1][0].shape[0]
    n_mlp = len(mlp_params)

    # ---- one-time parameter prep: pre-transpose, per-gate split, bf16 cast ----
    wd_wt = lstm_params["wd_w"].T.astype(jnp.bfloat16)                    # (H, H)
    wd_b = lstm_params["wd_b"].reshape(1, H).astype(jnp.float32)          # (1, H)
    wall_wt_g = (lstm_params["wall_w"].reshape(4, H, H)
                 .transpose(0, 2, 1).astype(jnp.bfloat16))                # (4, H, H)
    uall_wt_g = (lstm_params["uall_w"].reshape(4, H, D)
                 .transpose(0, 2, 1).astype(jnp.bfloat16))                # (4, D, H)
    gate_bias = (lstm_params["wall_b"] + lstm_params["uall_b"]).reshape(
        4, 1, H).astype(jnp.float32)                                      # (4, 1, H)

    mlp_flat, mlp_specs = [], []
    for w, bias in mlp_params:
        wt = w.T.astype(jnp.bfloat16)                                     # (in, out)
        bb = bias.reshape(1, -1).astype(jnp.float32)                      # (1, out)
        mlp_flat += [wt, bb]
        mlp_specs += [pl.BlockSpec(wt.shape, lambda s: (0, 0)),
                      pl.BlockSpec(bb.shape, lambda s: (0, 0))]

    # ---- activations (seq-major layout for the sequential grid axis) ----
    x_sbd = jnp.transpose(x, (1, 0, 2)).astype(jnp.bfloat16)              # (seq, b, D)
    t_sb1 = jnp.transpose(timestamps, (1, 0))[:, :, None].astype(jnp.float32)

    # ---- hoisted input projection: one big parallel matmul over all steps ----
    xu_gates = input_projection(x_sbd, uall_wt_g, gate_bias)              # (4, seq, b, H)

    # ---- recurrence + fused MLP head (sequential over seq) ----
    kernel = functools.partial(_time_lstm_mlp_kernel, n_mlp)
    return pl.pallas_call(
        kernel,
        out_shape=jax.ShapeDtypeStruct((b, ntargets), jnp.float32),
        grid=(seq,),
        in_specs=[
            pl.BlockSpec((4, None, b, H), lambda s: (0, s, 0, 0)),   # xu, step s
            pl.BlockSpec((seq, b, 1), lambda s: (0, 0, 0)),          # all timestamps
            pl.BlockSpec((H, H), lambda s: (0, 0)),                  # Wd^T
            pl.BlockSpec((1, H), lambda s: (0, 0)),                  # Wd bias
            pl.BlockSpec((4, H, H), lambda s: (0, 0, 0)),            # Wall^T per gate
            *mlp_specs,                                              # MLP W^T / bias
        ],
        out_specs=pl.BlockSpec((b, ntargets), lambda s: (0, 0)),
        scratch_shapes=[pltpu.VMEM((b, H), jnp.float32),             # h carry
                        pltpu.VMEM((b, H), jnp.float32)],            # c carry
        compiler_params=pltpu.CompilerParams(
            dimension_semantics=("arbitrary",),
            vmem_limit_bytes=48 * 1024 * 1024),
    )(xu_gates, t_sb1, wd_wt, wd_b, wall_wt_g, *mlp_flat)


# ----------------------------------------------------------------------------
# Pure-JAX f32 reference (mirrors the PyTorch code) for the correctness check.
# ----------------------------------------------------------------------------
def _reference_forward(x, timestamps, lstm_params, mlp_params):
    b, seq, _ = x.shape
    H = lstm_params["wd_w"].shape[0]
    h = jnp.zeros((b, H), jnp.float32)
    c = jnp.zeros((b, H), jnp.float32)
    for s in range(seq):
        c_s1 = jnp.tanh(c @ lstm_params["wd_w"].T + lstm_params["wd_b"])
        c_s2 = c_s1 * timestamps[:, s:s + 1]
        c_adj = (c - c_s1) + c_s2
        outs = (h @ lstm_params["wall_w"].T + lstm_params["wall_b"]
                + x[:, s] @ lstm_params["uall_w"].T + lstm_params["uall_b"])
        f, i, o, c_tmp = jnp.split(jax.nn.sigmoid(outs), 4, axis=1)
        c = f * c_adj + i * c_tmp
        h = o * jnp.tanh(c)
    out = h
    n = len(mlp_params)
    for li, (w, bias) in enumerate(mlp_params):
        out = out @ w.T + bias
        if li < n - 1:
            out = jnp.maximum(out, 0.0)
    return out


# ----------------------------------------------------------------------------
# Deterministic parameter construction (PyTorch layout: W (out, in), b (out,))
# ----------------------------------------------------------------------------
def make_params(key, input_size, lstm_hidden, mlp_hidden, num_layers, ntargets):
    keys = jax.random.split(key, 5 + num_layers)

    def lin(k, out_f, in_f, scale=0.1):
        kw, kb = jax.random.split(k)
        w = scale * jax.random.normal(kw, (out_f, in_f), jnp.float32)
        b = scale * jax.random.normal(kb, (out_f,), jnp.float32)
        return w, b

    wd_w, wd_b = lin(keys[0], lstm_hidden, lstm_hidden)
    wall_w, wall_b = lin(keys[1], 4 * lstm_hidden, lstm_hidden)
    uall_w, uall_b = lin(keys[2], 4 * lstm_hidden, input_size)
    lstm_params = dict(wd_w=wd_w, wd_b=wd_b, wall_w=wall_w, wall_b=wall_b,
                       uall_w=uall_w, uall_b=uall_b)

    mlp_params = [lin(keys[3], mlp_hidden, lstm_hidden)]
    for li in range(num_layers):
        mlp_params.append(lin(keys[4 + li], mlp_hidden, mlp_hidden))
    mlp_params.append(lin(keys[4 + num_layers], ntargets, mlp_hidden))
    return lstm_params, mlp_params


if __name__ == "__main__":
    # Small, module-consistent shapes.
    batch, seq = 4, 8
    input_size = 32          # PyTorch default is 768; scaled down
    lstm_hidden = 32         # lstm_hidden_size
    mlp_hidden = 32          # hidden_size
    num_layers = 2
    ntargets = 1

    key = jax.random.PRNGKey(0)
    kx, kt, kp = jax.random.split(key, 3)
    x = jax.random.normal(kx, (batch, seq, input_size), jnp.float32)
    timestamps = jax.random.uniform(kt, (batch, seq), jnp.float32)

    lstm_params, mlp_params = make_params(
        kp, input_size, lstm_hidden, mlp_hidden, num_layers, ntargets)

    out = time_lstm_mlp_forward(x, timestamps, lstm_params, mlp_params)
    out = jax.block_until_ready(out)

    ref = _reference_forward(x, timestamps, lstm_params, mlp_params)
    assert out.shape == (batch, ntargets)
    # bf16 matmul operands with f32 accumulation -> slightly looser tolerance
    # than a pure-f32 comparison.
    assert jnp.allclose(out, ref, atol=2e-2, rtol=2e-2), (out, ref)

    # TODO(synk): Dropout is identity (inference); training would need PRNG masks.
    print("KERNEL_OK")
</pallas_src>

<mosaic_0001>
module attributes {stable_mosaic.version = 11 : i64} {
  func.func @_input_proj_kernel(%arg0: i32, %arg1: i32, %arg2: memref<1x4x32xbf16, #tpu.memory_space<vmem>>, %arg3: memref<1x32x32xbf16, #tpu.memory_space<vmem>>, %arg4: memref<1x1x32xf32, #tpu.memory_space<vmem>>, %arg5: memref<1x1x4x32xf32, #tpu.memory_space<vmem>>) attributes {dimension_semantics = [#tpu.dimension_semantics<parallel>, #tpu.dimension_semantics<parallel>], iteration_bounds = array<i64: 4, 8>, scalar_prefetch = 0 : i64, scratch_operands = 0 : i64, tpu.core_type = #tpu.core_type<tc>, window_params = [{transform_indices = @transform_0, window_bounds = array<i64: 1, 4, 32>}, {transform_indices = @transform_1, window_bounds = array<i64: 1, 32, 32>}, {transform_indices = @transform_2, window_bounds = array<i64: 1, 1, 32>}, {transform_indices = @transform_3, window_bounds = array<i64: 1, 1, 4, 32>}]} {
    %c0 = arith.constant 0 : index
    %c0_0 = arith.constant 0 : index
    %c0_1 = arith.constant 0 : index
    %0 = vector.load %arg2[%c0, %c0_0, %c0_1] : memref<1x4x32xbf16, #tpu.memory_space<vmem>>, vector<1x4x32xbf16>
    %1 = vector.shape_cast %0 : vector<1x4x32xbf16> to vector<4x32xbf16>
    %c0_2 = arith.constant 0 : index
    %c0_3 = arith.constant 0 : index
    %c0_4 = arith.constant 0 : index
    %2 = vector.load %arg3[%c0_2, %c0_3, %c0_4] : memref<1x32x32xbf16, #tpu.memory_space<vmem>>, vector<1x32x32xbf16>
    %3 = vector.shape_cast %2 : vector<1x32x32xbf16> to vector<32x32xbf16>
    %cst = arith.constant dense<0.000000e+00> : vector<4x32xf32>
    %4 = tpu.matmul %1, %3, %cst {dimension_numbers = #tpu.dot_dimension_numbers<[1], [0], [0], [1], [0, 0, 1, 1], [], []>} : vector<4x32xbf16>, vector<32x32xbf16>, vector<4x32xf32> -> vector<4x32xf32>
    %c0_5 = arith.constant 0 : index
    %c0_6 = arith.constant 0 : index
    %c0_7 = arith.constant 0 : index
    %5 = vector.load %arg4[%c0_5, %c0_6, %c0_7] : memref<1x1x32xf32, #tpu.memory_space<vmem>>, vector<1x1x32xf32>
    %6 = vector.shape_cast %5 : vector<1x1x32xf32> to vector<1x32xf32>
    %7 = vector.broadcast %6 : vector<1x32xf32> to vector<4x32xf32>
    %8 = arith.addf %4, %7 : vector<4x32xf32>
    %c0_8 = arith.constant 0 : index
    %c0_9 = arith.constant 0 : index
    %c0_10 = arith.constant 0 : index
    %c0_11 = arith.constant 0 : index
    %9 = vector.load %arg5[%c0_8, %c0_9, %c0_10, %c0_11] : memref<1x1x4x32xf32, #tpu.memory_space<vmem>>, vector<1x1x4x32xf32>
    %10 = vector.shape_cast %9 : vector<1x1x4x32xf32> to vector<4x32xf32>
    %11 = vector.shape_cast %8 : vector<4x32xf32> to vector<1x1x4x32xf32>
    tpu.vector_store %arg5[%c0_8, %c0_9, %c0_10, %c0_11], %11 {strides = array<i32>} : memref<1x1x4x32xf32, #tpu.memory_space<vmem>>, vector<1x1x4x32xf32>,
    return
  }
  func.func @transform_0(%arg0: i32, %arg1: i32) -> (i32, i32, i32) {
    %c0_i32 = arith.constant 0 : i32
    %c0_i32_0 = arith.constant 0 : i32
    %c0_i32_1 = arith.constant 0 : i32
    return %arg1, %c0_i32, %c0_i32_0 : i32, i32, i32
  }
  func.func @transform_1(%arg0: i32, %arg1: i32) -> (i32, i32, i32) {
    %c0_i32 = arith.constant 0 : i32
    %c0_i32_0 = arith.constant 0 : i32
    %c0_i32_1 = arith.constant 0 : i32
    return %arg0, %c0_i32, %c0_i32_0 : i32, i32, i32
  }
  func.func @transform_2(%arg0: i32, %arg1: i32) -> (i32, i32, i32) {
    %c0_i32 = arith.constant 0 : i32
    %c0_i32_0 = arith.constant 0 : i32
    %c0_i32_1 = arith.constant 0 : i32
    return %arg0, %c0_i32, %c0_i32_0 : i32, i32, i32
  }
  func.func @transform_3(%arg0: i32, %arg1: i32) -> (i32, i32, i32, i32) {
    %c0_i32 = arith.constant 0 : i32
    %c0_i32_0 = arith.constant 0 : i32
    %c0_i32_1 = arith.constant 0 : i32
    return %arg0, %arg1, %c0_i32, %c0_i32_0 : i32, i32, i32, i32
  }
}

</mosaic_0001>

<bundles_post_ra>
// kernel: tpu_custom_call.1
= control target key start
LH: loop header
LB: loop body
LE: loop exit
PB: predicated region body
PF: predicated region fallthrough
CT: control target
= control target key end

     0   :  { %s1218_s0 = inlined_call_operand.hbm [shape: bf16[8,4,32], index: 0, kind: input, shape index: {}]   ;;  %s1219_s1 = inlined_call_operand.hbm [shape: bf16[4,32,32], index: 1, kind: input, shape index: {}]   ;;  %s1220_s2 = inlined_call_operand.hbm [shape: f32[4,1,32], index: 2, kind: input, shape index: {}]   ;;  %s1221_s3 = inlined_call_operand.hbm [shape: f32[4,8,4,32], index: 3, kind: output, shape index: {}]  }
   0x1   :  { %1229 = sst [smem:[#allocation21_spill]] %s1218_s0 }
   0x2   :  { %1230 = sst [smem:[#allocation22_spill]] %s1219_s1 }
   0x3   :  { %1231 = sst [smem:[#allocation23_spill]] %s1221_s3 }
   0x4   :  { %8 = vsyncpa [#allocation3], 0 }
   0x5   :  { %10 = vsyncpa [#allocation3 + $0x1], 0 }
   0x6   :  { %11 = vsyncpa [#allocation6], 0 }
   0x7   :  { %13 = vsyncpa [#allocation6 + $0x1], 0 }
   0x8   :  { %14 = vsyncpa [#allocation4], 0 }
   0x9   :  { %16 = vsyncpa [#allocation4 + $0x1], 0  ;;  %s920_s12 = smov 0   ;;  %s922_s13 = smov 0  }
   0xa   :  { %s924_s14 = smov 0   ;;  %s926_s15 = smov 0  }
   0xb   :  { %s928_s16 = smov 0   ;;  %s930_s17 = smov 0  }
   0xc   :  { %s932_s18 = smov 0   ;;  %s934_s19 = smov 0  }
   0xd   :  { %s936_s20 = smov 0   ;;  %s938_s21 = smov 0  }
   0xe   :  { %s940_s22 = smov 0   ;;  %s942_s23 = smov 0  }
   0xf   :  { %s944_s24 = smov 0   ;;  %s946_s25 = smov 0  }
  0x10 LB: > { %1232 = sst [smem:[#allocation12_spill]] %s870_s20  ;;  %p49_p0 = scmp.eq.s32.totalorder %s890_s25, 0  ;;  %s890_s25 = sphi %s946_s25, %s22_s25   ;;  %s886_s24 = sphi %s944_s24, %s1278_s24   ;;  %s882_s23 = sphi %s942_s23, %s1265_s23   ;;  %s878_s22 = sphi %s940_s22, %s1277_s22   ;;  %s874_s21 = sphi %s938_s21, %s1276_s21   ;;  %s870_s20 = sphi %s936_s20, %s1275_s20   ;;  %s866_s19 = sphi %s934_s19, %s1274_s19   ;;  %s862_s18 = sphi %s932_s18, %s1273_s18   ;;  %s858_s17 = sphi %s930_s17, %s1272_s17   ;;  %s854_s16 = sphi %s928_s16, %s1271_s16   ;;  %s850_s15 = sphi %s926_s15, %s1270_s15   ;;  %s846_s14 = sphi %s924_s14, %s1269_s14   ;;  %s842_s13 = sphi %s922_s13, %s1268_s13   ;;  %s838_s12 = sphi %s920_s12, %s1267_s12  }
  0x11   : > { %1233 = sst [smem:[#allocation13_spill]] %s874_s21  ;;  %p74_p1 = scmp.ne.s32.totalorder %s858_s17, %s854_s16 }
  0x12   : > { %1234 = sst [smem:[#allocation14_spill]] %s878_s22  ;;  %p80_p2 = scmp.ne.s32.totalorder %s854_s16, %s850_s15 }
  0x13   : > { %1235 = sst [smem:[#allocation15_spill]] %s882_s23  ;;  %p76_p3 = por %p74_p1, %p49_p0 }
  0x14   : > { %p538_p4 = scmp.lt.s32.totalorder %s890_s25, 32  ;;  %s176_s26 = sand.u32 1, %s890_s25  }
  0x15   : > { %s1222_s27 = sand.u32 1, %s858_s17   ;;  %s504_s29 = sshll.u32 %s886_s24, 8 }
  0x16   : > { %s487_s28 = sshll.u32 %s1222_s27, 4  ;;  %s1236_s1 = sld [smem:[#allocation22_spill]] }
  0x17   : > { %s180_s6 = scalar_lea.vmem [#allocation5], %s487_s28  ;;  %p1008_p5 = pnand %p538_p4, %p76_p3 }
  0x18   : > { %s187_s7 = sshll.u32 %s180_s6, 4  ;;  %p491_p6 = scmp.ge.s32.totalorder %s890_s25, 1  ;;  %s188_s7 = int_to_ptr.vmem [resolvable:$true] %s187_s7 }
  0x19   : > { %s1013_s9 = scalar_lea.sflag [#allocation6], %s176_s26  ;;  %p1225_p7 = pneg %p1008_p5 }
  0x1a   : > { %s671_s10 = scalar_lea.vmem %s188_s7, 256  ;;  %s892_s11 = smov [#allocation5]  }
  0x1b   : > { %p672_p8 = scmp.ne.s32.totalorder %s188_s7, %s671_s10  ;;  %s676_s28 = sshll.u32 %s892_s11, 4  ;;  %s677_s28 = int_to_ptr.vmem [resolvable:$false] %s676_s28 }
  0x1c   : > { %s186_s5 = scalar_lea.hbm %s1236_s1, %s504_s29  ;;  %s678_s29 = scalar_lea.vmem %s677_s28, 512 }
  0x1d   : > { %p674_p9 = pnand %p672_p8, %p1225_p7  ;;  %p679_p11 = scmp.lt.s32.totalorder %s188_s7, %s677_s28 }
  0x1e   : > { %p680_p12 = scmp.lt.s32.totalorder %s678_s29, %s671_s10 }
  0x1f   : > { %p675_p10 = pneg %p674_p9 }
  0x20   : > { %p681_p13 = por %p680_p12, %p679_p11 }
  0x22   : > { %p682_p1 = pnand %p681_p13, %p675_p10 }
  0x24   : > { %685 = shalt.err (!%p682_p1)
}
  0x25   : > { %s893_s30 = smov 64   ;;  %s894_s26 = smov 4  }
  0x26   : > { %530 = dma.hbm_to_vmem [thread:$0]  (!%p1008_p5), %s186_s5, 256, %s188_s7, %s1013_s9, %s893_s30, %s893_s30, %s894_s26  }
  0x27   : > { %p212_p3 = scmp.lt.s32.totalorder %s890_s25, 33  ;;  %s1031_s6 = sadd.s32 4294967295, %s890_s25  }
  0x28   : > { %s31_s11 = sadd.s32 1, %s882_s23  ;;  %s34_s28 = sadd.s32 1, %s886_s24 }
  0x29   : > { %p1026_p8 = pnand %p491_p6, %p212_p3  ;;  %p32_p9 = scmp.ge.s32.totalorder %s31_s11, 8 }
  0x2a   : > { %s41_s29 = sadd.s32 1, %s870_s20  ;;  %p48_p10 = scmp.ne.s32.totalorder %s870_s20, %s866_s19 }
  0x2b   : > { %p54_p11 = scmp.ne.s32.totalorder %s866_s19, %s862_s18  ;;  %s1280_s11 = smov (%p32_p9, %s31_s11), 0 }
  0x2c   : > { %1239 = sst [smem:[#allocation16_spill]] %s1280_s11  ;;  %s1282_s28 = smov (!%p32_p9, %s34_s28), %s886_s24 }
  0x2d   : > { %s38_s5 = ssub.s32 %s882_s23, %s1280_s11  ;;  %p1048_p6 = por %p49_p0, %p48_p10 }
  0x2e   : > { %p36_p12 = scmp.ge.s32.totalorder %s1282_s28, 4  ;;  %p39_p13 = scmp.eq.s32.totalorder %s38_s5, 0 }
  0x2f   : > { %p55_p1 = scmp.eq.s32.totalorder %s1031_s6, 0  ;;  %s67_s18 = sadd.s32 1, %s858_s17 }
  0x30   : > { %s1284_s28 = smov (%p36_p12, %s1282_s28), 0  ;;  %s121_s11 = sadd.s32 1, %s846_s14 }
  0x31   : > { %1241 = sst [smem:[#allocation17_spill]] %s1284_s28  ;;  %p1059_p0 = por %p55_p1, %p54_p11 }
  0x32   : > { %s1057_s30 = scalar_select %p39_p13, %s870_s20, %s41_s29  }
  0x33   : > { %s64_s27 = ssub.s32 %s886_s24, %s1284_s28  ;;  %p1068_p9 = por %p80_p2, %p55_p1 }
  0x34   : > { %1242 = sst [smem:[#allocation18_spill]] %s1057_s30  ;;  %p65_p3 = scmp.eq.s32.totalorder %s64_s27, 0 }
  0x35   : > { %s118_s1 = sor.u32 %s64_s27, %s38_s5  ;;  %p131_p12 = scmp.ne.s32.totalorder %s846_s14, %s842_s13 }
  0x36   : > { %s1074_s3 = scalar_select %p65_p3, %s858_s17, %s67_s18  }
  0x37   : > { %p119_p10 = scmp.eq.s32.totalorder %s118_s1, 0  ;;  %p132_p13 = scmp.eq.s32.totalorder %s1031_s6, 31 }
  0x38   : > { %1245 = sst [smem:[#allocation19_spill]] %s1074_s3  ;;  %p137_p11 = scmp.ne.s32.totalorder %s842_s13, %s838_s12 }
  0x39   : > { %s1082_s29 = scalar_select %p119_p10, %s846_s14, %s121_s11  }
  0x3a   : > { %p1084_p7 = por %p132_p13, %p131_p12  ;;  %s1248_s15 = sadd.s32 4294967294, %s890_s25  }
  0x3b   : > { %1246 = sst [smem:[#allocation20_spill]] %s1082_s29  ;;  %p138_p2 = scmp.eq.s32.totalorder %s1248_s15, 31 }
  0x3c   : > { %s158_s30 = sand.u32 1, %s870_s20   ;;  %s486_s21 = sshll.u32 %s882_s23, 5 }
  0x3d   : > { %p1092_p1 = por %p138_p2, %p137_p11  ;;  %s485_s27 = sshll.u32 %s158_s30, 1 }
  0x3e   : > { %s1250_s0 = sld [smem:[#allocation21_spill]]  ;;  %p1103_p3 = pnand %p538_p4, %p1048_p6 }
  0x3f   : > { %s1249_s22 = scalar_select %p1092_p1, 1, 0 }
  0x40   : > { %s162_s3 = scalar_lea.vmem [#allocation2], %s485_s27  ;;  %s159_s23 = scalar_lea.sflag [#allocation3], %s158_s30 }
  0x41   : > { %s169_s15 = sshll.u32 %s162_s3, 4  ;;  %p688_p10 = pneg %p1103_p3  ;;  %s170_s15 = int_to_ptr.vmem [resolvable:$true] %s169_s15 }
  0x42   : > { %s699_s20 = scalar_lea.vmem %s170_s15, 32  ;;  %s895_s29 = smov [#allocation2]  }
  0x43   : > { %p700_p12 = scmp.ne.s32.totalorder %s170_s15, %s699_s20  ;;  %s704_s5 = sshll.u32 %s895_s29, 4  ;;  %s705_s5 = int_to_ptr.vmem [resolvable:$false] %s704_s5 }
  0x44   : > { %s167_s18 = scalar_lea.hbm %s1250_s0, %s486_s21  ;;  %s706_s21 = scalar_lea.vmem %s705_s5, 64 }
  0x45   : > { %p702_p13 = pnand %p700_p12, %p688_p10  ;;  %p707_p2 = scmp.lt.s32.totalorder %s170_s15, %s705_s5 }
  0x46   : > { %p708_p4 = scmp.lt.s32.totalorder %s706_s21, %s699_s20 }
  0x47   : > { %p703_p11 = pneg %p702_p13 }
  0x48   : > { %p709_p6 = por %p708_p4, %p707_p2 }
  0x4a   : > { %p710_p1 = pnand %p709_p6, %p703_p11 }
  0x4c   : > { %713 = shalt.err (!%p710_p1)
}
  0x4d   : > { %527 = dma.hbm_to_vmem [thread:$0]  (!%p1103_p3), %s167_s18, 32, %s170_s15, %s159_s23  }
  0x4e   : > { %s490_s3 = sshll.u32 %s886_s24, 4  ;;  %s1252_s7 = sand.u32 1, %s858_s17  }
  0x4f   : > { %s200_s30 = scalar_lea.vmem [#allocation7], %s1252_s7  ;;  %s205_s29 = scalar_lea.hbm %s1220_s2, %s490_s3 }
  0x50   : > { %s207_s27 = sshll.u32 %s200_s30, 4  ;;  %p1253_p12 = pneg %p1008_p5  ;;  %s208_s27 = int_to_ptr.vmem [resolvable:$true] %s207_s27 }
  0x51   : > { %s727_s5 = scalar_lea.vmem %s208_s27, 16  ;;  %s896_s20 = smov [#allocation7]  }
  0x52   : > { %p728_p10 = scmp.ne.s32.totalorder %s208_s27, %s727_s5  ;;  %s732_s11 = sshll.u32 %s896_s20, 4  ;;  %s733_s11 = int_to_ptr.vmem [resolvable:$false] %s732_s11 }
  0x53   : > { %s734_s21 = scalar_lea.vmem %s733_s11, 32  ;;  %p735_p3 = scmp.lt.s32.totalorder %s208_s27, %s733_s11 }
  0x54   : > { %p730_p1 = pnand %p728_p10, %p1253_p12  ;;  %p736_p11 = scmp.lt.s32.totalorder %s734_s21, %s727_s5 }
  0x56   : > { %p731_p13 = pneg %p730_p1  ;;  %p737_p2 = por %p736_p11, %p735_p3 }
  0x58   : > { %p738_p4 = pnand %p737_p2, %p731_p13 }
  0x5a   : > { %741 = shalt.err (!%p738_p4)
}
  0x5b   : > { %533 = dma.hbm_to_vmem [thread:$0]  (!%p1008_p5), %s205_s29, 16, %s208_s27, %s1013_s9  }
  0x5c   : > { %216 = sbr.rel (%p1026_p8) target bundleno = 320 (0x140), region = 32  ;;  %s218_s0 = sand.u32 (!%p1026_p8), 1, %s866_s19  }
  0x5d   : > { %s492_s23 = sshll.u32 (!%p1026_p8), %s218_s0, 1  ;;  %s219_s18 = scalar_lea.sflag (!%p1026_p8), [#allocation3], %s218_s0 }
  0x5e   : > { %s222_s15 = scalar_lea.vmem (!%p1026_p8), [#allocation2], %s492_s23 }
  0x61   : > { %825 = dma.done.wait (%p1059_p0), %s219_s18, 32  }
  0x62   : > { %827 = vsyncadd (%p1059_p0), %s219_s18, 4294967264  ;;  %s227_s8 = sand.u32 1, %s1031_s6   ;;  %s229_s3 = sand.u32 1, %s854_s16  }
  0x63   : > { %s493_s9 = sshll.u32 %s229_s3, 4  ;;  %s228_s7 = scalar_lea.sflag [#allocation6], %s227_s8 }
  0x64   : > { %s231_s4 = scalar_lea.vmem [#allocation5], %s493_s9 }
  0x65   : > { %829 = dma.done.wait (%p1068_p9), %s228_s7, 272  }
  0x66   : > { %831 = vsyncadd (%p1068_p9), %s228_s7, 4294967024  ;;  %s1254_s30 = sld [smem:[#allocation14_spill]]  ;;  %v897_v0 = vmov 0.0   ;;  %vm898_vm0 = vmmov 0   ;;  %v656_v1 = vld [vmem:[%s231_s4 + $0x8] sm:$0xff]   ;;  %v657_v2 = vld [vmem:[%s231_s4] sm:$0xff]  }
  0x67   : > { %s1255_s27 = sld [smem:[#allocation13_spill]]  ;;  %508 = vmatprep.subr.bf16.mxu0 %v897_v0  ;;  %512 = vmatprep.mubr.msk.bf16.mxu0 %vm898_vm0, %v897_v0  ;;  %v272_v3 = vld [vmem:[%s222_s15] sm:$0x3]  ;;  %vm296_vm1 = vcmask 261120   ;;  %s268_s6 = sand.u32 1, %s842_s13   ;;  %vm340_vm2 = vcmask 257024  }
  0x68   : > { %509 = vmatpush3.bf16.msra.mxu0 %v656_v1  ;;  %s494_s26 = sshll.u32 %s268_s6, 2  ;;  %s239_s29 = scalar_lea.vmem [#allocation7], %s229_s3 }
  0x69   : > { %510 = vmatprep.subr.bf16.mxu0 %v897_v0  ;;  %v495_v4 = vld [vmem:[%s239_s29] ss:$0 sm:$0xff]  ;;  %s270_s20 = scalar_lea.vmem [#allocation8], %s494_s26  ;;  %s1256_s23 = sld [smem:[#allocation23_spill]] }
  0x6a   : > { %s358_s11 = sshll.u32 %s270_s20, 4  ;;  %s343_s15 = scalar_lea.sflag [#allocation4], %s268_s6  ;;  %s1144_s11 = int_to_ptr.vmem [resolvable:$true] %s358_s11 }
  0x6b   : > { %s742_s3 = scalar_lea.vmem %s1144_s11, 64  ;;  %s899_s9 = smov [#allocation8]  }
  0x6c   : > { %511 = vmatpush3.bf16.msra.mxu0 %v657_v2  ;;  %s500_s1 = sshll.u32 %s1254_s30, 3  ;;  %p743_p5 = scmp.ne.s32.totalorder %s1144_s11, %s742_s3 }
  0x6d   : > { %s354_s10 = sadd.s32 %s1255_s27, %s500_s1  ;;  %s746_s7 = sshll.u32 %s899_s9, 4  ;;  %s747_s7 = int_to_ptr.vmem [resolvable:$false] %s746_s7 }
  0x6e   : > { %s501_s5 = sshll.u32 %s354_s10, 6  ;;  %p744_p8 = pnand %p743_p5, %p1084_p7 }
  0x6f   : > { %513 = vmatmul.mubr.msk.bf16.vlgmr.msra.gmra.mxu0 %vm296_vm1, %v272_v3  ;;  %s1257_s8 = smov %s1256_s23  ;;  %s1142_s18 = scalar_lea.hbm %s1256_s23, %s501_s5 }
  0x70   : > { %p745_p0 = pneg %p744_p8  ;;  %s748_s4 = scalar_lea.vmem %s747_s7, 128 }
  0x71   : > { %p749_p9 = scmp.lt.s32.totalorder %s1144_s11, %s747_s7  ;;  %p750_p6 = scmp.lt.s32.totalorder %s748_s4, %s742_s3 }
  0x73   : > { %p751_p10 = por %p750_p6, %p749_p9 }
  0x75   : > { %p752_p12 = pnand %p751_p10, %p745_p0 }
 0x12f   : > { %v334_v5 = vpop.f32.mrf.mxu0 }
 0x130   : > { %v335_v6 = vadd.f32 %v495_v4, %v334_v5 }
 0x131   : > { %v514_v7 = vpop.f32.mrf.mxu0 }
 0x132   : > { %341 = vst.msk [vmem:[%s270_s20] sm:$0xf] %vm340_vm2, %v335_v6 }
 0x133   : > { %v337_v8 = vpop.f32.mrf.mxu0 }
 0x134   : > { %755 = shalt.err (!%p752_p12)
}
 0x135   : > { %s756_s30 = scalar_lea.hbm %s1142_s18, 64  ;;  %s760_s26 = scalar_lea.hbm %s1257_s8, 2048 }
 0x136   : > { %p757_p1 = scmp.ne.s32.totalorder %s1142_s18, %s756_s30  ;;  %p761_p11 = scmp.lt.s32.totalorder %s1142_s18, %s1257_s8 }
 0x137   : > { %p762_p2 = scmp.lt.s32.totalorder %s760_s26, %s756_s30 }
 0x138   : > { %p758_p13 = pnand %p757_p1, %p1084_p7 }
 0x139   : > { %p763_p4 = por %p762_p2, %p761_p11 }
 0x13a   : > { %p759_p3 = pneg %p758_p13 }
 0x13c   : > { %p764_p5 = pnand %p763_p4, %p759_p3 }
 0x13e   : > { %767 = shalt.err (!%p764_p5)
}
 0x13f   : > { %522 = dma.vmem_to_hbm [thread:$0]  (%p1084_p7), %s1144_s11, 64, %s1142_s18, %s343_s15   ;;  %v515_v9 = vpop.f32.mrf.mxu0 }
 0x140 PF: > { %p539_p8 = scmp.ge.s32.totalorder %s890_s25, 2  ;;  %s370_s29 = sand.u32 1, %s838_s12  }
 0x141   : > { %p1258_p0 = scmp.ne.s32.totalorder %s1249_s22, 0  ;;  %s371_s5 = scalar_lea.sflag [#allocation4], %s370_s29 }
 0x143   : > { %p535_p9 = pnand %p539_p8, %p1258_p0 }
 0x145   : > { %p536_p6 = pneg %p535_p9 }
 0x147   : > { %833 = dma.done.wait (%p536_p6), %s371_s5, 64  }
 0x148   : > { %835 = vsyncadd (%p536_p6), %s371_s5, 4294967232  ;;  %s22_s25 = sadd.s32 1, %s890_s25   ;;  %s1260_s20 = sld [smem:[#allocation20_spill]] }
 0x149   : > { %p1171_p10 = scmp.ge.s32.totalorder %s22_s25, 34   ;;  %s1261_s11 = sld [smem:[#allocation19_spill]] }
 0x14a   : > { %s1262_s21 = sld [smem:[#allocation12_spill]]  ;;  %s1267_s12 = smov %s842_s13 }
 0x14b   : > { %s1263_s22 = sld [smem:[#allocation18_spill]]  ;;  %s1268_s13 = smov %s846_s14 }
 0x14c   : > { %s1264_s0 = sld [smem:[#allocation15_spill]]  ;;  %s1270_s15 = smov %s854_s16 }
 0x14d   : > { %s1265_s23 = sld [smem:[#allocation16_spill]]  ;;  %s1271_s16 = smov %s858_s17 }
 0x14e   : > { %s1266_s3 = sld [smem:[#allocation17_spill]]  ;;  %s1269_s14 = smov %s1260_s20 }
 0x14f   : > { %s1272_s17 = smov %s1261_s11  ;;  %s1273_s18 = smov %s866_s19 }
 0x150   : > { %s1274_s19 = smov %s1262_s21  ;;  %21 = sbr.rel (!%p1171_p10) target bundleno = 16 (0x10), region = 101 }
 0x151   : > { %s1275_s20 = smov %s1263_s22  ;;  %s1277_s22 = smov %s886_s24 }
 0x152   : > { %s1276_s21 = smov %s1264_s0 }
 0x154   : > { %s1278_s24 = smov %s1266_s3 }
 0x155   :  { %376 = vsyncpa [#allocation3], 1 }
 0x156   :  { %378 = vsyncpa [#allocation3 + $0x1], 1 }
 0x157   :  { %379 = vsyncpa [#allocation6], 1 }
 0x158   :  { %381 = vsyncpa [#allocation6 + $0x1], 1 }
 0x159   :  { %382 = vsyncpa [#allocation4], 1 }
 0x15a   :  { %384 = vsyncpa [#allocation4 + $0x1], 1 }

</bundles_post_ra>
